<compile_context>
chip_gen: v5e
topology: v5e:2x2
jax: 0.10.0
libtpu: 0.0.40
codegen_flags: <defaults>
</compile_context>

<pallas_src>
import functools

import jax
import jax.numpy as jnp
from jax.experimental import pallas as pl
from jax.experimental.pallas import tpu as pltpu

HIDDEN = 400  # fc3 output features, fixed by the PyTorch module


def _round_up(x, m):
    return ((x + m - 1) // m) * m


def _cdiv(a, b):
    return -(-a // b)


def decoder_kernel(z_ref, w3_ref, b3_ref, w4_ref, b4_ref, out_ref):
    # z arrives as f32 straight from HBM; the bf16 cast happens here (VPU),
    # avoiding a separate XLA dispatch + an extra HBM pass over z.
    z_bf16 = z_ref[...].astype(jnp.bfloat16)

    # fc3 + ReLU: bf16 operands into the MXU, f32 accumulation, bias/relu on VPU.
    hidden = jnp.dot(z_bf16, w3_ref[...], preferred_element_type=jnp.float32)
    hidden = jnp.maximum(hidden + b3_ref[...], 0.0)

    # fc4 on the current TN-wide column slab of w4: bf16 MXU, f32 accumulation.
    out = jnp.dot(hidden.astype(jnp.bfloat16), w4_ref[...],
                  preferred_element_type=jnp.float32)
    out_ref[...] = (out + b4_ref[...]).astype(out_ref.dtype)


def _pick_tb(B):
    """Batch tile: full batch in one step when it fits (block == full array dim
    is always legal, even for tiny B); otherwise big tiles to amortize the
    ~0.35us/step overhead, with a small penalty for wasted (masked) rows."""
    if B <= 512:
        return B
    best = None
    for tb in (512, 256, 128):
        nb = _cdiv(B, tb)
        waste = nb * tb - B
        cost = nb * 64 + waste          # per-step overhead ~ 64 wasted rows
        if best is None or cost < best[0]:
            best = (cost, tb)
    return best[1]


def _pick_tn(hw_pad, n_b):
    """fc4 output-column tile. Must divide hw_pad (a multiple of 128) so the
    output stores stay lane-dense; capped so the w4 / f32 out tiles stay small
    for large decoders; when the whole batch is one step, force >= 2 N-steps so
    v7x's second TensorCore is not idle."""
    if n_b == 1:
        cap = max(128, min(512, hw_pad // 2))
    else:
        cap = 1024
    if hw_pad <= cap:
        return hw_pad
    for cand in (1024, 512, 384, 256, 128):
        if cand <= cap and hw_pad % cand == 0:
            return cand
    return 128


@functools.partial(jax.jit, static_argnames=("h", "w"))
def decoder_forward(z, w3, b3, w4, b4, h, w):
    """z: (B, latent_dim) f32 -> (B, 1, h, w) f32.

    w3/b3/w4/b4 are the padded, (in, out)-layout params from prepare_params():
      w3: (latent_dim, hidden_pad) bf16    b3: (1, hidden_pad) f32
      w4: (hidden_pad, hw_pad)     bf16    b4: (1, hw_pad)     f32
    """
    B, latent_dim = z.shape
    hidden_pad = w3.shape[1]
    hw_pad = w4.shape[1]
    hw = h * w
    assert w4.shape[0] == hidden_pad and hw_pad >= hw

    TB = _pick_tb(B)
    n_b = _cdiv(B, TB)
    TN = _pick_tn(hw_pad, n_b)
    n_n = hw_pad // TN

    flops = 2 * B * (latent_dim * hidden_pad + hidden_pad * hw_pad)
    bytes_accessed = (B * latent_dim * 4                              # z  (f32)
                      + latent_dim * hidden_pad * 2 + hidden_pad * 4  # w3, b3
                      + hidden_pad * hw_pad * 2 + hw_pad * 4          # w4, b4
                      + B * hw_pad * 4)                               # out(f32)

    out_flat = pl.pallas_call(
        decoder_kernel,
        out_shape=jax.ShapeDtypeStruct((B, hw_pad), jnp.float32),
        grid=(n_b, n_n),
        in_specs=[
            # z tile follows only the batch axis (no re-DMA across the N axis).
            pl.BlockSpec((TB, latent_dim), lambda i, j: (i, 0)),
            # fc3 weights/bias: fixed block index -> stay resident in VMEM.
            pl.BlockSpec((latent_dim, hidden_pad), lambda i, j: (0, 0)),
            pl.BlockSpec((1, hidden_pad), lambda i, j: (0, 0)),
            # fc4 weights/bias: column slab follows the N axis (pipelined DMA).
            pl.BlockSpec((hidden_pad, TN), lambda i, j: (0, j)),
            pl.BlockSpec((1, TN), lambda i, j: (0, j)),
        ],
        out_specs=pl.BlockSpec((TB, TN), lambda i, j: (i, j)),
        compiler_params=pltpu.CompilerParams(
            # Both axes are independent: megacore / v7x can shard them over TCs.
            dimension_semantics=("parallel", "parallel"),
            # Kernel needs < 4 MiB; 32 MiB leaves headroom even on v7x (64 MiB).
            vmem_limit_bytes=32 * 1024 * 1024,
        ),
        cost_estimate=pl.CostEstimate(
            flops=flops, transcendentals=0, bytes_accessed=bytes_accessed),
    )(z, w3, b3, w4, b4)

    # Drop lane padding (no-op when hw is already a multiple of 128), then
    # z.view(B, 1, h, w).
    return out_flat[:, :hw].reshape(B, 1, h, w)


def prepare_params(w3, b3, w4, b4, h, w):
    """Pad hidden / hw up to multiples of 128 and cast weights to bf16.

    Zero padding is exact: padded hidden columns produce relu(0 + 0) = 0 and
    the corresponding (zero) rows of w4 contribute nothing; padded output
    columns are 0 and get sliced away in decoder_forward.  latent_dim (the
    contraction dim of fc3) is intentionally NOT padded.
    """
    latent_dim, hidden = w3.shape
    hw = h * w
    assert w4.shape == (hidden, hw)

    hidden_pad = _round_up(hidden, 128)   # 400 -> 512
    hw_pad = _round_up(hw, 128)

    w3p = jnp.pad(w3, ((0, 0), (0, hidden_pad - hidden))).astype(jnp.bfloat16)
    b3p = jnp.pad(b3.reshape(1, hidden), ((0, 0), (0, hidden_pad - hidden)))
    b3p = b3p.astype(jnp.float32)
    w4p = jnp.pad(w4, ((0, hidden_pad - hidden), (0, hw_pad - hw))).astype(jnp.bfloat16)
    b4p = jnp.pad(b4.reshape(1, hw), ((0, 0), (0, hw_pad - hw))).astype(jnp.float32)
    return w3p, b3p, w4p, b4p


def init_params(key, latent_dim, h, w):
    """Synthetic params matching nn.Linear's default init, stored (in, out)."""
    k1, k2, k3, k4 = jax.random.split(key, 4)
    hw = h * w
    bound3 = 1.0 / jnp.sqrt(latent_dim)
    bound4 = 1.0 / jnp.sqrt(HIDDEN)
    w3 = jax.random.uniform(k1, (latent_dim, HIDDEN), jnp.float32, -bound3, bound3)
    b3 = jax.random.uniform(k2, (HIDDEN,), jnp.float32, -bound3, bound3)
    w4 = jax.random.uniform(k3, (HIDDEN, hw), jnp.float32, -bound4, bound4)
    b4 = jax.random.uniform(k4, (hw,), jnp.float32, -bound4, bound4)
    return w3, b3, w4, b4


if __name__ == "__main__":
    # Small shapes: batch=2, latent_dim=32, image 16x16 -> fc4 out = 256
    B, latent_dim, H, W = 2, 32, 16, 16

    key = jax.random.PRNGKey(0)
    kz, kp = jax.random.split(key)
    z = jax.random.normal(kz, (B, latent_dim), jnp.float32)
    w3, b3, w4, b4 = init_params(kp, latent_dim, H, W)
    w3p, b3p, w4p, b4p = prepare_params(w3, b3, w4, b4, H, W)

    out = decoder_forward(z, w3p, b3p, w4p, b4p, H, W)
    out = jax.block_until_ready(out)

    # Reference in plain JAX (f32). The kernel runs its matmuls with bf16
    # inputs (f32 accumulation), so use a bf16-appropriate tolerance.
    ref = (jnp.maximum(z @ w3 + b3[None, :], 0.0) @ w4 + b4[None, :]).reshape(B, 1, H, W)
    assert out.shape == (B, 1, H, W)
    assert jnp.allclose(out, ref, atol=2e-2, rtol=2e-2), (
        float(jnp.max(jnp.abs(out - ref))))

    print("KERNEL_OK")
</pallas_src>

<mosaic_0001>
module attributes {stable_mosaic.version = 11 : i64} {
  func.func @decoder_kernel(%arg0: i32, %arg1: i32, %arg2: memref<2x32xf32, #tpu.memory_space<vmem>>, %arg3: memref<32x512xbf16, #tpu.memory_space<vmem>>, %arg4: memref<1x512xf32, #tpu.memory_space<vmem>>, %arg5: memref<512x128xbf16, #tpu.memory_space<vmem>>, %arg6: memref<1x128xf32, #tpu.memory_space<vmem>>, %arg7: memref<2x128xf32, #tpu.memory_space<vmem>>) attributes {dimension_semantics = [#tpu.dimension_semantics<parallel>, #tpu.dimension_semantics<parallel>], iteration_bounds = array<i64: 1, 2>, scalar_prefetch = 0 : i64, scratch_operands = 0 : i64, tpu.core_type = #tpu.core_type<tc>, window_params = [{transform_indices = @transform_0, window_bounds = array<i64: 2, 32>}, {pipeline_mode = #tpu.pipeline_mode<synchronous>, transform_indices = @transform_1, window_bounds = array<i64: 32, 512>}, {pipeline_mode = #tpu.pipeline_mode<synchronous>, transform_indices = @transform_2, window_bounds = array<i64: 1, 512>}, {transform_indices = @transform_3, window_bounds = array<i64: 512, 128>}, {transform_indices = @transform_4, window_bounds = array<i64: 1, 128>}, {transform_indices = @transform_5, window_bounds = array<i64: 2, 128>}]} {
    %c0 = arith.constant 0 : index
    %c0_0 = arith.constant 0 : index
    %0 = vector.load %arg2[%c0, %c0_0] : memref<2x32xf32, #tpu.memory_space<vmem>>, vector<2x32xf32>
    %1 = arith.truncf %0 : vector<2x32xf32> to vector<2x32xbf16>
    %c0_1 = arith.constant 0 : index
    %c0_2 = arith.constant 0 : index
    %2 = vector.load %arg3[%c0_1, %c0_2] : memref<32x512xbf16, #tpu.memory_space<vmem>>, vector<32x512xbf16>
    %cst = arith.constant dense<0.000000e+00> : vector<2x512xf32>
    %3 = tpu.matmul %1, %2, %cst {dimension_numbers = #tpu.dot_dimension_numbers<[1], [0], [0], [1], [0, 0, 1, 1], [], []>} : vector<2x32xbf16>, vector<32x512xbf16>, vector<2x512xf32> -> vector<2x512xf32>
    %c0_3 = arith.constant 0 : index
    %c0_4 = arith.constant 0 : index
    %4 = vector.load %arg4[%c0_3, %c0_4] : memref<1x512xf32, #tpu.memory_space<vmem>>, vector<1x512xf32>
    %5 = vector.broadcast %4 : vector<1x512xf32> to vector<2x512xf32>
    %6 = arith.addf %3, %5 : vector<2x512xf32>
    %cst_5 = arith.constant 0.000000e+00 : f32
    %7 = vector.broadcast %cst_5 : f32 to vector<2x512xf32>
    %8 = arith.maximumf %6, %7 : vector<2x512xf32>
    %9 = arith.truncf %8 : vector<2x512xf32> to vector<2x512xbf16>
    %c0_6 = arith.constant 0 : index
    %c0_7 = arith.constant 0 : index
    %10 = vector.load %arg5[%c0_6, %c0_7] : memref<512x128xbf16, #tpu.memory_space<vmem>>, vector<512x128xbf16>
    %cst_8 = arith.constant dense<0.000000e+00> : vector<2x128xf32>
    %11 = tpu.matmul %9, %10, %cst_8 {dimension_numbers = #tpu.dot_dimension_numbers<[1], [0], [0], [1], [0, 0, 1, 1], [], []>} : vector<2x512xbf16>, vector<512x128xbf16>, vector<2x128xf32> -> vector<2x128xf32>
    %c0_9 = arith.constant 0 : index
    %c0_10 = arith.constant 0 : index
    %12 = vector.load %arg6[%c0_9, %c0_10] : memref<1x128xf32, #tpu.memory_space<vmem>>, vector<1x128xf32>
    %13 = vector.broadcast %12 : vector<1x128xf32> to vector<2x128xf32>
    %14 = arith.addf %11, %13 : vector<2x128xf32>
    %c0_11 = arith.constant 0 : index
    %c0_12 = arith.constant 0 : index
    %15 = vector.load %arg7[%c0_11, %c0_12] : memref<2x128xf32, #tpu.memory_space<vmem>>, vector<2x128xf32>
    tpu.vector_store %arg7[%c0_11, %c0_12], %14 {strides = array<i32>} : memref<2x128xf32, #tpu.memory_space<vmem>>, vector<2x128xf32>,
    return
  }
  func.func @transform_0(%arg0: i32, %arg1: i32) -> (i32, i32) {
    %c0_i32 = arith.constant 0 : i32
    %c0_i32_0 = arith.constant 0 : i32
    return %arg0, %c0_i32 : i32, i32
  }
  func.func @transform_1(%arg0: i32, %arg1: i32) -> (i32, i32) {
    %c0_i32 = arith.constant 0 : i32
    %c0_i32_0 = arith.constant 0 : i32
    %c0_i32_1 = arith.constant 0 : i32
    return %c0_i32, %c0_i32_0 : i32, i32
  }
  func.func @transform_2(%arg0: i32, %arg1: i32) -> (i32, i32) {
    %c0_i32 = arith.constant 0 : i32
    %c0_i32_0 = arith.constant 0 : i32
    %c0_i32_1 = arith.constant 0 : i32
    return %c0_i32, %c0_i32_0 : i32, i32
  }
  func.func @transform_3(%arg0: i32, %arg1: i32) -> (i32, i32) {
    %c0_i32 = arith.constant 0 : i32
    %c0_i32_0 = arith.constant 0 : i32
    return %c0_i32, %arg1 : i32, i32
  }
  func.func @transform_4(%arg0: i32, %arg1: i32) -> (i32, i32) {
    %c0_i32 = arith.constant 0 : i32
    %c0_i32_0 = arith.constant 0 : i32
    return %c0_i32, %arg1 : i32, i32
  }
  func.func @transform_5(%arg0: i32, %arg1: i32) -> (i32, i32) {
    %c0_i32 = arith.constant 0 : i32
    return %arg0, %arg1 : i32, i32
  }
}

</mosaic_0001>

<bundles_post_ra>
// kernel: decoder_forward.1
= control target key start
LH: loop header
LB: loop body
LE: loop exit
PB: predicated region body
PF: predicated region fallthrough
CT: control target
= control target key end

     0   :  { %10 = vsyncpa [#allocation3], 0  ;;  %s1612_s0 = inlined_call_operand.hbm [shape: f32[2,32], index: 0, kind: input, shape index: {}]   ;;  %s1613_s1 = inlined_call_operand.hbm [shape: bf16[32,512], index: 1, kind: input, shape index: {}]   ;;  %s1614_s2 = inlined_call_operand.hbm [shape: f32[1,512], index: 2, kind: input, shape index: {}]   ;;  %s1615_s3 = inlined_call_operand.hbm [shape: bf16[512,256], index: 3, kind: input, shape index: {}]   ;;  %s1616_s4 = inlined_call_operand.vmem [shape: f32[1,256], index: 4, kind: input, shape index: {}]   ;;  %s1617_s5 = inlined_call_operand.vmem [shape: f32[2,256], index: 5, kind: output, shape index: {}]  }
   0x1   :  { %11 = vsyncpa [#allocation5], 0 }
   0x2   :  { %12 = vsyncpa [#allocation8], 0 }
   0x3   :  { %14 = vsyncpa [#allocation8 + $0x1], 0  ;;  %s1433_s18 = smov 0   ;;  %s1435_s19 = smov 0  }
   0x4   :  { %s1437_s20 = smov 0   ;;  %s1439_s21 = smov 0  }
   0x5   :  { %s1441_s22 = smov 0   ;;  %s1443_s23 = smov 0  }
   0x6 LB: > { %s902_s24 = sadd.s32 4294967295, %s1393_s23   ;;  %p120_p0 = scmp.ne.s32.totalorder %s1377_s19, %s1373_s18  ;;  %s1393_s23 = sphi %s1443_s23, %s20_s23   ;;  %s1389_s22 = sphi %s1441_s22, %s1627_s22   ;;  %s1385_s21 = sphi %s1439_s21, %s1626_s21   ;;  %s1381_s20 = sphi %s1437_s20, %s1625_s20   ;;  %s1377_s19 = sphi %s1435_s19, %s1624_s19   ;;  %s1373_s18 = sphi %s1433_s18, %s1623_s18  }
   0x7   : > { %p1463_p1 = scmp.eq.s32.totalorder %s902_s24, 0  ;;  %p904_p2 = scmp.ge.s32.totalorder %s1393_s23, 1 }
   0x8   : > { %p185_p3 = scmp.lt.s32.totalorder %s1393_s23, 3  ;;  %s210_s29 = sshll.u32 %s1613_s1, 4  ;;  %s211_s29 = int_to_ptr.hbm [resolvable:$true] %s210_s29 }
   0x9   : > { %p1471_p4 = por %p1463_p1, %p120_p0  ;;  %s1395_s6 = smov [#allocation4]  }
   0xa   : > { %p1478_p5 = pnand %p904_p2, %p185_p3  ;;  %s212_s7 = sshll.u32 %s1395_s6, 4  ;;  %s213_s7 = int_to_ptr.vmem [resolvable:$true] %s212_s7 }
   0xb   : > { %s199_s11 = sshll.u32 %s1612_s0, 4  ;;  %s1396_s12 = smov 256   ;;  %s200_s11 = int_to_ptr.hbm [resolvable:$true] %s199_s11 }
   0xc   : > { %p1137_p6 = pneg %p1478_p5  ;;  %s1397_s13 = smov 16  }
   0xd   : > { %s1398_s14 = smov [#allocation2]   ;;  %s225_s18 = sshll.u32 %s1614_s2, 4  ;;  %s226_s18 = int_to_ptr.hbm [resolvable:$true] %s225_s18 }
   0xe   : > { %p1486_p7 = pnand %p1137_p6, %p1463_p1  ;;  %s201_s15 = sshll.u32 %s1398_s14, 4  ;;  %s202_s15 = int_to_ptr.vmem [resolvable:$true] %s201_s15 }
   0xf   : > { %s1399_s24 = smov [#allocation6]   ;;  %s29_s28 = sadd.s32 1, %s1389_s22 }
  0x10   : > { %1143 = dma.hbm_to_vmem [thread:$0]  (!%p1486_p7), %s211_s29, 1024, %s213_s7, [#allocation5], %s1396_s12, %s1396_s12, %s1397_s13  }
  0x11   : > { %1140 = dma.hbm_to_vmem [thread:$0]  (!%p1486_p7), %s200_s11, 32, %s202_s15, [#allocation3]  }
  0x12   : > { %s227_s27 = sshll.u32 %s1399_s24, 4  ;;  %p30_p8 = scmp.ge.s32.totalorder %s29_s28, 2  ;;  %s228_s27 = int_to_ptr.vmem [resolvable:$true] %s227_s27 }
  0x13   : > { %1146 = dma.hbm_to_vmem [thread:$0]  (!%p1486_p7), %s226_s18, 64, %s228_s27, [#allocation5]  }
  0x14   : > { %s107_s29 = sadd.s32 1, %s1381_s20  ;;  %p114_p9 = scmp.ne.s32.totalorder %s1381_s20, %s1377_s19 }
  0x15   : > { %p115_p10 = scmp.eq.s32.totalorder %s1393_s23, 0  ;;  %s1629_s28 = smov (%p30_p8, %s29_s28), 0 }
  0x16   : > { %p1154_p12 = scmp.lt.s32.totalorder %s1393_s23, 2  ;;  %s104_s7 = ssub.s32 %s1389_s22, %s1629_s28 }
  0x17   : > { %p1509_p11 = por %p115_p10, %p114_p9  ;;  %s238_s9 = sand.u32 1, %s1381_s20  }
  0x18   : > { %p105_p13 = scmp.eq.s32.totalorder %s104_s7, 0  ;;  %s909_s8 = sshll.u32 %s238_s9, 8 }
  0x19   : > { %s910_s10 = sshll.u32 %s1389_s22, 2  ;;  %s242_s16 = scalar_lea.vmem [#allocation7], %s909_s8 }
  0x1a   : > { %s1519_s11 = scalar_select %p105_p13, %s1381_s20, %s107_s29  }
  0x1b   : > { %s246_s14 = scalar_lea.hbm %s1615_s3, %s910_s10  ;;  %s249_s17 = sshll.u32 %s242_s16, 4  ;;  %s250_s17 = int_to_ptr.vmem [resolvable:$true] %s249_s17 }
  0x1c   : > { %s247_s15 = sshll.u32 %s246_s14, 4  ;;  %p1148_p0 = pnand %p1154_p12, %p1509_p11  ;;  %s248_s15 = int_to_ptr.hbm [resolvable:$true] %s247_s15 }
  0x1d   : > { %s239_s18 = scalar_lea.sflag [#allocation8], %s238_s9  ;;  %s1400_s24 = smov 128  }
  0x1e   : > { %s1401_s27 = smov 64   ;;  %s1402_s7 = smov 4  }
  0x1f   : > { %1150 = dma.hbm_to_vmem [thread:$0]  (!%p1148_p0), %s248_s15, 4096, %s250_s17, %s239_s18, %s1400_s24, %s1401_s27, %s1402_s7  }
  0x20   : > { %267 = sbr.rel (%p1478_p5) target bundleno = 333 (0x14d), region = 40 }
  0x25   : > { %1360 = dma.done.wait (%p1463_p1), [#allocation3], 32  }
  0x26   : > { %1362 = vsyncadd (%p1463_p1), [#allocation3], 4294967264 }
  0x27   : > { %1364 = dma.done.wait (%p1463_p1), [#allocation5], 1088  }
  0x28   : > { %1366 = vsyncadd (%p1463_p1), [#allocation5], 4294966208  ;;  %s284_s29 = sand.u32 1, %s1377_s19  }
  0x29   : > { %s915_s6 = sshll.u32 %s284_s29, 8  ;;  %s285_s9 = scalar_lea.sflag [#allocation8], %s284_s29 }
  0x2a   : > { %s1539_s8 = scalar_lea.vmem [#allocation7], %s915_s6 }
  0x2b   : > { %1368 = dma.done.wait (%p1471_p4), %s285_s9, 4096  }
  0x2c   : > { %1370 = vsyncadd (%p1471_p4), %s285_s9, 4294963200  ;;  %v943_v0 = vld [vmem:[#allocation4 + $0x28] sm:$0xf]  ;;  %v1090_v1 = vld [vmem:[#allocation4 + $0x34] sm:$0xf0]  ;;  %vm394_vm0 = vcmask 261120  }
  0x2d   : > { %v1088_v2 = vld [vmem:[#allocation4 + $0x2c] sm:$0xf]  ;;  %v944_v3 = vor.u32 %v1090_v1, %v943_v0  ;;  %v945_v4 = vld [vmem:[#allocation4 + $0x38] sm:$0xf0]  ;;  %v935_v5 = vld [vmem:[#allocation4 + $0x20] sm:$0xf] }
  0x2e   : > { %v1089_v6 = vld [vmem:[#allocation4 + $0x2c] sm:$0xf0]  ;;  %v948_v7 = vor.u32 %v1088_v2, %v945_v4  ;;  %v1087_v9 = vld [vmem:[#allocation4 + $0x24] sm:$0xf]  ;;  %v937_v10 = vld [vmem:[#allocation4 + $0x30] sm:$0xf0] }
  0x2f   : > { %v936_v8 = vor.u32 %v1089_v6, %v935_v5  ;;  %v927_v11 = vld [vmem:[#allocation4 + $0x8] sm:$0xf]  ;;  %430 = vmatpush.bf16.msra.mxu2 %v944_v3  ;;  %v940_v12 = vor.u32 %v1087_v9, %v937_v10  ;;  %v1086_v13 = vld [vmem:[#allocation4 + $0x14] sm:$0xf0]  ;;  %v1084_v14 = vld [vmem:[#allocation4 + $0xc] sm:$0xf] }
  0x30   : > { %v929_v15 = vld [vmem:[#allocation4 + $0x18] sm:$0xf0]  ;;  %443 = vmatpush.bf16.msra.mxu3 %v948_v7  ;;  %v928_v16 = vor.u32 %v1086_v13, %v927_v11  ;;  %v919_v18 = vld [vmem:[#allocation4] sm:$0xf]  ;;  %v1085_v19 = vld [vmem:[#allocation4 + $0xc] sm:$0xf0] }
  0x31   : > { %404 = vmatpush.bf16.msra.mxu0 %v936_v8  ;;  %v932_v17 = vor.u32 %v1084_v14, %v929_v15  ;;  %v334_v20 = vld [vmem:[#allocation2] sm:$0x3]  ;;  %417 = vmatpush.bf16.msra.mxu1 %v940_v12  ;;  %v920_v21 = vor.u32 %v1085_v19, %v919_v18  ;;  %v1083_v22 = vld [vmem:[#allocation4 + $0x4] sm:$0xf]  ;;  %v921_v23 = vld [vmem:[#allocation4 + $0x10] sm:$0xf0] }
  0x32   : > { %v1098_v24 = vld [vmem:[%s1539_s8 + $0x38] sm:$0xff]  ;;  %v335_v25 = vpack.c.bf16 %v334_v20, %v334_v20  ;;  %v924_v26 = vor.u32 %v1083_v22, %v921_v23  ;;  %v1097_v30 = vld [vmem:[%s1539_s8 + $0x30] sm:$0xff]  ;;  %v1096_v34 = vld [vmem:[%s1539_s8 + $0x28] sm:$0xff]  ;;  %p322_p1 = scmp.lt.s32.totalorder %s1385_s21, 1 }
  0x33   : > { %v1106_v27 = vld [vmem:[%s1539_s8 + $0x78] sm:$0xff]  ;;  %431 = vmatpush.bf16.msra.mxu2 %v928_v16  ;;  %v1105_v31 = vld [vmem:[%s1539_s8 + $0x70] sm:$0xff]  ;;  %v1104_v35 = vld [vmem:[%s1539_s8 + $0x68] sm:$0xff] }
  0x34   : > { %444 = vmatpush.bf16.msra.mxu3 %v932_v17  ;;  %v1114_v28 = vld [vmem:[%s1539_s8 + $0xb8] sm:$0xff]  ;;  %v1113_v32 = vld [vmem:[%s1539_s8 + $0xb0] sm:$0xff]  ;;  %v1112_v36 = vld [vmem:[%s1539_s8 + $0xa8] sm:$0xff]  ;;  %s1631_s21 = smov (!%p322_p1, %s1385_s21), 1 }
  0x35   : > { %405 = vmatpush.bf16.msra.mxu0 %v920_v21  ;;  %418 = vmatpush.bf16.msra.mxu1 %v924_v26  ;;  %v1122_v29 = vld [vmem:[%s1539_s8 + $0xf8] sm:$0xff]  ;;  %v1121_v33 = vld [vmem:[%s1539_s8 + $0xf0] sm:$0xff]  ;;  %v1120_v37 = vld [vmem:[%s1539_s8 + $0xe8] sm:$0xff]  ;;  %s324_s30 = scalar_lea.vmem %s1616_s4, %s1631_s21  ;;  %s916_s13 = sshll.u32 %s1631_s21, 1 }
  0x36   : > { %951 = vmatmul.msk.bf16.vlgmr.msra.gmra.mxu2 %vm394_vm0, %v335_v25  ;;  %v1095_v38 = vld [vmem:[%s1539_s8 + $0x20] sm:$0xff]  ;;  %v1094_v42 = vld [vmem:[%s1539_s8 + $0x18] sm:$0xff]  ;;  %v1093_v46 = vld [vmem:[%s1539_s8 + $0x10] sm:$0xff]  ;;  %s332_s16 = scalar_lea.vmem %s1617_s5, %s916_s13 }
  0x37   : > { %952 = vmatmul.msk.bf16.vlgmr.msra.gmra.mxu3 %vm394_vm0, %v335_v25  ;;  %744 = vmatpush.bf16.msrb.mxu2 %v1114_v28  ;;  %v1103_v39 = vld [vmem:[%s1539_s8 + $0x60] sm:$0xff]  ;;  %v1102_v43 = vld [vmem:[%s1539_s8 + $0x58] sm:$0xff]  ;;  %v1101_v47 = vld [vmem:[%s1539_s8 + $0x50] sm:$0xff] }
  0x38   : > { %949 = vmatmul.msk.bf16.vlgmr.msra.gmra.mxu0 %vm394_vm0, %v335_v25  ;;  %950 = vmatmul.msk.bf16.vlgmr.msra.gmra.mxu1 %vm394_vm0, %v335_v25  ;;  %v1111_v40 = vld [vmem:[%s1539_s8 + $0xa0] sm:$0xff]  ;;  %v1110_v44 = vld [vmem:[%s1539_s8 + $0x98] sm:$0xff]  ;;  %v1109_v48 = vld [vmem:[%s1539_s8 + $0x90] sm:$0xff] }
  0x39   : > { %718 = vmatpush.bf16.msrb.mxu0 %v1098_v24  ;;  %731 = vmatpush.bf16.msrb.mxu1 %v1106_v27  ;;  %v1119_v41 = vld [vmem:[%s1539_s8 + $0xe0] sm:$0xff]  ;;  %v1118_v45 = vld [vmem:[%s1539_s8 + $0xd8] sm:$0xff]  ;;  %v1117_v49 = vld [vmem:[%s1539_s8 + $0xd0] sm:$0xff] }
  0x3a   : > { %757 = vmatpush.bf16.msrb.mxu3 %v1122_v29  ;;  %v1092_v50 = vld [vmem:[%s1539_s8 + $0x8] sm:$0xff]  ;;  %v1091_v54 = vld [vmem:[%s1539_s8] sm:$0xff]  ;;  %v344_v58 = vld [vmem:[#allocation6] sm:$0xf] }
  0x3b   : > { %745 = vmatpush.bf16.msrb.mxu2 %v1113_v32  ;;  %v1100_v51 = vld [vmem:[%s1539_s8 + $0x48] sm:$0xff]  ;;  %v1099_v55 = vld [vmem:[%s1539_s8 + $0x40] sm:$0xff]  ;;  %v346_v59 = vperm.slane %v344_v58, 0  ;;  %v347_v60 = vperm.slane %v344_v58, 1  ;;  %v348_v1 = vperm.slane %v344_v58, 2  ;;  %v349_v3 = vperm.slane %v344_v58, 3 }
  0x3c   : > { %v1108_v52 = vld [vmem:[%s1539_s8 + $0x88] sm:$0xff]  ;;  %v1107_v56 = vld [vmem:[%s1539_s8 + $0x80] sm:$0xff]  ;;  %v1214_v19 = vld [vmem:[%s324_s30] ss:$0 sm:$0xff] }
  0x3d   : > { %719 = vmatpush.bf16.msrb.mxu0 %v1097_v30  ;;  %732 = vmatpush.bf16.msrb.mxu1 %v1105_v31  ;;  %v1116_v53 = vld [vmem:[%s1539_s8 + $0xc8] sm:$0xff]  ;;  %v1115_v57 = vld [vmem:[%s1539_s8 + $0xc0] sm:$0xff] }
  0x3e   : > { %758 = vmatpush.bf16.msrb.mxu3 %v1121_v33 }
  0x3f   : > { %746 = vmatpush.bf16.msrb.mxu2 %v1112_v36 }
  0x41   : > { %720 = vmatpush.bf16.msrb.mxu0 %v1096_v34  ;;  %733 = vmatpush.bf16.msrb.mxu1 %v1104_v35 }
  0x42   : > { %759 = vmatpush.bf16.msrb.mxu3 %v1120_v37 }
  0x43   : > { %747 = vmatpush.bf16.msrb.mxu2 %v1111_v40 }
  0x45   : > { %721 = vmatpush.bf16.msrb.mxu0 %v1095_v38  ;;  %734 = vmatpush.bf16.msrb.mxu1 %v1103_v39 }
  0x46   : > { %760 = vmatpush.bf16.msrb.mxu3 %v1119_v41 }
  0x47   : > { %748 = vmatpush.bf16.msrb.mxu2 %v1110_v44 }
  0x49   : > { %722 = vmatpush.bf16.msrb.mxu0 %v1094_v42  ;;  %735 = vmatpush.bf16.msrb.mxu1 %v1102_v43 }
  0x4a   : > { %761 = vmatpush.bf16.msrb.mxu3 %v1118_v45 }
  0x4b   : > { %749 = vmatpush.bf16.msrb.mxu2 %v1109_v48 }
  0x4d   : > { %723 = vmatpush.bf16.msrb.mxu0 %v1093_v46  ;;  %736 = vmatpush.bf16.msrb.mxu1 %v1101_v47 }
  0x4e   : > { %762 = vmatpush.bf16.msrb.mxu3 %v1117_v49 }
  0x4f   : > { %750 = vmatpush.bf16.msrb.mxu2 %v1108_v52 }
  0x51   : > { %724 = vmatpush.bf16.msrb.mxu0 %v1092_v50  ;;  %737 = vmatpush.bf16.msrb.mxu1 %v1100_v51 }
  0x52   : > { %763 = vmatpush.bf16.msrb.mxu3 %v1116_v53 }
  0x53   : > { %751 = vmatpush.bf16.msrb.mxu2 %v1107_v56 }
  0x55   : > { %725 = vmatpush.bf16.msrb.mxu0 %v1091_v54  ;;  %738 = vmatpush.bf16.msrb.mxu1 %v1099_v55 }
  0x56   : > { %764 = vmatpush.bf16.msrb.mxu3 %v1115_v57 }
  0xb5   : > { %v407_v61 = vpop.f32.mrf.mxu0  ;;  %v420_v63 = vpop.f32.mrf.mxu1 }
  0xb6   : > { %v408_v62 = vadd.f32 %v407_v61, %v346_v59  ;;  %v421_v0 = vadd.f32 %v420_v63, %v347_v60 }
  0xb8   : > { %v450_v2 = vmax.f32 %v408_v62, 0.0  ;;  %v451_v4 = vmax.f32 %v421_v0, 0.0 }
  0xb9   : > { %v433_v6 = vpop.f32.mrf.mxu2 }
  0xba   : > { %v454_v5 = vpack.c.bf16 %v450_v2, %v450_v2  ;;  %v455_v7 = vpack.c.bf16 %v451_v4, %v451_v4  ;;  %v434_v8 = vadd.f32 %v433_v6, %v348_v1  ;;  %v446_v9 = vpop.f32.mrf.mxu3 }
  0xbb   : > { %v447_v10 = vadd.f32 %v446_v9, %v349_v3 }
  0xbc   : > { %726 = vmatmul.bf16.vlgmr.msrb.gmra.mxu0 %v454_v5  ;;  %v452_v11 = vmax.f32 %v434_v8, 0.0  ;;  %739 = vmatmul.bf16.vlgmr.msrb.gmra.mxu1 %v455_v7 }
  0xbd   : > { %v409_v12 = vpop.f32.mrf.mxu0  ;;  %v453_v13 = vmax.f32 %v447_v10, 0.0  ;;  %v422_v14 = vpop.f32.mrf.mxu1 }
  0xbe   : > { %v456_v15 = vpack.c.bf16 %v452_v11, %v452_v11 }
  0xbf   : > { %v457_v16 = vpack.c.bf16 %v453_v13, %v453_v13 }
  0xc0   : > { %752 = vmatmul.bf16.vlgmr.msrb.gmra.mxu2 %v456_v15 }
  0xc1   : > { %765 = vmatmul.bf16.vlgmr.msrb.gmra.mxu3 %v457_v16  ;;  %v435_v17 = vpop.f32.mrf.mxu2 }
  0xc2   : > { %v448_v18 = vpop.f32.mrf.mxu3 }
 0x139   : > { %v727_v20 = vpop.f32.mrf.mxu0  ;;  %v740_v21 = vpop.f32.mrf.mxu1 }
 0x13a   : > { %v728_v22 = vadd.f32 %v1214_v19, %v727_v20 }
 0x13c   : > { %v741_v23 = vadd.f32 %v740_v21, %v728_v22 }
 0x141   : > { %v729_v24 = vpop.f32.mrf.mxu0  ;;  %v742_v25 = vpop.f32.mrf.mxu1 }
 0x143   : > { %v753_v26 = vpop.f32.mrf.mxu2 }
 0x144   : > { %v754_v27 = vadd.f32 %v753_v26, %v741_v23  ;;  %v766_v28 = vpop.f32.mrf.mxu3 }
 0x146   : > { %v767_v29 = vadd.f32 %v766_v28, %v754_v27 }
 0x148   : > { %770 = vst [vmem:[%s332_s16] sm:$0x3] %v767_v29 }
 0x14b   : > { %v755_v30 = vpop.f32.mrf.mxu2 }
 0x14c   : > { %v768_v31 = vpop.f32.mrf.mxu3 }
 0x14d PF: > { %s20_s23 = sadd.s32 1, %s1393_s23   ;;  %s1623_s18 = smov %s1377_s19 }
 0x14e   : > { %p17_p2 = scmp.ge.s32.totalorder %s20_s23, 4   ;;  %s1624_s19 = smov %s1381_s20 }
 0x14f   : > { %s1625_s20 = smov %s1519_s11  ;;  %s1626_s21 = smov %s1389_s22 }
 0x150   : > { %s1627_s22 = smov %s1629_s28  ;;  %19 = sbr.rel (!%p17_p2) target bundleno = 6 (0x6), region = 97 }
 0x155   :  { %798 = vsyncpa [#allocation3], 1 }
 0x156   :  { %800 = vsyncpa [#allocation3 + $0x1], 1 }
 0x157   :  { %801 = vsyncpa [#allocation5], 1 }
 0x158   :  { %802 = vsyncpa [#allocation8], 1 }
 0x159   :  { %804 = vsyncpa [#allocation8 + $0x1], 1 }

</bundles_post_ra>
